<compile_context>
chip_gen: v6e
topology: v6e:2x2x1
jax: 0.10.0
libtpu: 0.0.40
codegen_flags: <defaults>
</compile_context>

<pallas_src>
import functools

import jax
import jax.numpy as jnp
from jax.experimental import pallas as pl
from jax.experimental.pallas import tpu as pltpu


def _round_up(x, m):
    return ((x + m - 1) // m) * m


def _pad2(a, shape, value=0.0):
    pads = [(0, t - s) for s, t in zip(a.shape, shape)]
    if all(p == (0, 0) for p in pads):
        return a
    return jnp.pad(a, pads, constant_values=value)


def policynet_kernel(x_ref, w1_ref, b1_ref, w2_ref, b2_ref, o_ref):
    # x is already in the weight dtype (cast in the wrapper), so bf16 weights
    # hit the bf16-native MXU path on v5e/v6e/v7x; accumulation is f32.
    x = x_ref[...]

    # fc1 + bias + ReLU (bias/ReLU in f32 — v5e has no bf16 VPU).
    h = jnp.dot(x, w1_ref[...], preferred_element_type=jnp.float32)
    h = jnp.maximum(h + b1_ref[...], 0.0)

    # fc2.  Padded-lane logits come out as exactly -1e30 because w2's padded
    # columns are zero and b2's padded columns were filled with -1e30 at prep
    # time — no in-kernel iota/where mask needed.
    logits = jnp.dot(h.astype(w2_ref.dtype), w2_ref[...],
                     preferred_element_type=jnp.float32) + b2_ref[...]

    # Numerically stable softmax over dim=1 (padded columns exp to 0).
    m = jnp.max(logits, axis=1, keepdims=True)
    e = jnp.exp(logits - m)
    denom = jnp.sum(e, axis=1, keepdims=True)
    # approx=False keeps the 1e-5 allclose; flip to True only if VALU-bound
    # at large batch and ~2e-4 relative error is acceptable.
    o_ref[...] = (e * pl.reciprocal(denom, approx=False)).astype(o_ref.dtype)


def prep_policynet_params(w1, b1, w2, b2, *, weight_dtype=jnp.float32):
    """One-time parameter prep (do this at init / after each optimizer step,
    NOT per forward call): lane-pad feature dims to multiples of 128 and bake
    the softmax column mask into b2's padding.

    w1: [n_stats, n_hiddens] ([in, out]); b1: [1, n_hiddens] (or [n_hiddens]);
    w2: [n_hiddens, n_out];               b2: [1, n_out]     (or [n_out]).
    """
    n_stats, n_hiddens = w1.shape
    n_out = w2.shape[1]
    f_in = _round_up(n_stats, 128)
    f_hid = _round_up(n_hiddens, 128)
    f_out = _round_up(n_out, 128)

    w1_p = _pad2(w1.astype(weight_dtype), (f_in, f_hid))
    b1_p = _pad2(b1.reshape(1, -1).astype(jnp.float32), (1, f_hid))
    w2_p = _pad2(w2.astype(weight_dtype), (f_hid, f_out))
    # Mask baked into the bias padding: padded columns -> logits == -1e30.
    b2_p = _pad2(b2.reshape(1, -1).astype(jnp.float32), (1, f_out),
                 value=-1e30)
    return w1_p, b1_p, w2_p, b2_p


def policynet_forward(x, w1_p, b1_p, w2_p, b2_p, *, n_out, block_b=256,
                      single_buffer_weights=False):
    """x: [B, n_stats]; padded params from prep_policynet_params().
    Returns softmax probs [B, n_out] (f32)."""
    B, n_stats = x.shape
    f_in, f_hid = w1_p.shape
    f_out = w2_p.shape[1]
    assert n_stats <= f_in
    wdtype = w1_p.dtype

    # Batch tile: multiple of 16 sublanes (bf16 (16,128)-tile safe, also a
    # multiple of 8 for f32).  If the whole batch would fit in <= 2 tiles,
    # split it in two so the grid has >= 2 parallel steps and both v7x
    # TensorCores get work; otherwise cap at block_b.
    sub = 16
    if B <= 2 * block_b:
        tb = max(sub, _round_up(pl.cdiv(B, 2), sub))
    else:
        tb = block_b
    b_pad = _round_up(B, tb)
    grid = (b_pad // tb,)

    # Per-call work on x only: cast to the weight dtype (halves x DMA bytes
    # for bf16 weights) and pad batch/lanes.
    x_p = _pad2(x.astype(wdtype), (b_pad, f_in))

    # Resident (constant index_map) weights/biases.  On v7x with large
    # n_hiddens, set single_buffer_weights=True so they are single-buffered
    # and fit the 64 MiB VMEM; off by default.
    def resident(shape):
        if single_buffer_weights:
            return pl.BlockSpec(shape, lambda i: (0, 0),
                                pipeline_mode=pl.Buffered(1))
        return pl.BlockSpec(shape, lambda i: (0, 0))

    # Cost estimate with padded sizes (the real FLOP / DMA volume).
    wbytes = jnp.dtype(wdtype).itemsize
    cost = pl.CostEstimate(
        flops=2 * b_pad * (f_in * f_hid + f_hid * f_out),
        transcendentals=b_pad * f_out,
        bytes_accessed=(x_p.size * wbytes + w1_p.size * wbytes
                        + w2_p.size * wbytes + b1_p.size * 4 + b2_p.size * 4
                        + b_pad * f_out * 4),
    )

    # NOTE: for very large block_b / n_hiddens, add
    # pltpu.CompilerParams(vmem_limit_bytes=...) (v5e scoped default is only
    # 16 MiB).  Not needed at these sizes.
    out_padded = pl.pallas_call(
        policynet_kernel,
        out_shape=jax.ShapeDtypeStruct((b_pad, f_out), jnp.float32),
        grid=grid,
        in_specs=[
            pl.BlockSpec((tb, f_in), lambda i: (i, 0)),   # x: tiled over batch
            resident((f_in, f_hid)),                      # w1: VMEM-resident
            resident((1, f_hid)),                         # b1: VMEM-resident
            resident((f_hid, f_out)),                     # w2: VMEM-resident
            resident((1, f_out)),                         # b2 (+mask): resident
        ],
        out_specs=pl.BlockSpec((tb, f_out), lambda i: (i, 0)),
        compiler_params=pltpu.CompilerParams(
            dimension_semantics=("parallel",),
        ),
        cost_estimate=cost,
    )(x_p, w1_p, b1_p, w2_p, b2_p)

    # For genuinely tiny feature dims, an unpadded full-dim-block layout
    # (no wrapper pad / slice, masked 16-lane stores) may win — benchmark
    # before switching; this lane-dense layout is kept as the general path.
    return out_padded[:B, :n_out]


def init_policynet_params(key, n_stats, n_hiddens):
    """Deterministic init mimicking nn.Linear's U(-1/sqrt(fan_in), 1/sqrt(fan_in)).
    Weights are stored pre-transposed as [in, out]."""
    k1, k2, k3, k4 = jax.random.split(key, 4)
    lim1 = 1.0 / jnp.sqrt(jnp.float32(n_stats))
    lim2 = 1.0 / jnp.sqrt(jnp.float32(n_hiddens))
    w1 = jax.random.uniform(k1, (n_stats, n_hiddens), jnp.float32, -lim1, lim1)
    b1 = jax.random.uniform(k2, (1, n_hiddens), jnp.float32, -lim1, lim1)
    w2 = jax.random.uniform(k3, (n_hiddens, n_stats), jnp.float32, -lim2, lim2)
    b2 = jax.random.uniform(k4, (1, n_stats), jnp.float32, -lim2, lim2)
    return w1, b1, w2, b2


def reference_forward(x, w1, b1, w2, b2):
    h = jnp.maximum(x @ w1 + b1, 0.0)
    logits = h @ w2 + b2
    return jax.nn.softmax(logits, axis=1)


if __name__ == "__main__":
    B, n_stats, n_hiddens, n_actions = 8, 16, 32, 4  # n_actions unused by forward

    key = jax.random.PRNGKey(0)
    kx, kp = jax.random.split(key)
    x = jax.random.normal(kx, (B, n_stats), jnp.float32)
    w1, b1, w2, b2 = init_policynet_params(kp, n_stats, n_hiddens)

    ref = reference_forward(x, w1, b1, w2, b2)

    # f32 weights: tight tolerance.  Padding is hoisted: prep once, reuse.
    params_f32 = prep_policynet_params(w1, b1, w2, b2,
                                       weight_dtype=jnp.float32)
    fwd = jax.jit(functools.partial(policynet_forward, n_out=n_stats))
    out = jax.block_until_ready(fwd(x, *params_f32))
    assert out.shape == (B, n_stats)
    assert jnp.allclose(out, ref, atol=1e-5, rtol=1e-5)
    assert jnp.allclose(jnp.sum(out, axis=1), jnp.ones((B,)), atol=1e-5)

    # bf16 weights (MXU-native on v5e/v6e/v7x): looser tolerance expected.
    params_bf16 = prep_policynet_params(w1, b1, w2, b2,
                                        weight_dtype=jnp.bfloat16)
    out_bf16 = jax.block_until_ready(fwd(x, *params_bf16))
    assert out_bf16.shape == (B, n_stats)
    assert jnp.allclose(jnp.sum(out_bf16, axis=1), jnp.ones((B,)), atol=1e-2)
    assert jnp.allclose(out_bf16, ref, atol=5e-2)

    print("KERNEL_OK")
</pallas_src>

<mosaic_0001>
module attributes {stable_mosaic.version = 11 : i64} {
  func.func @policynet_kernel(%arg0: i32, %arg1: memref<16x128xf32, #tpu.memory_space<vmem>>, %arg2: memref<128x128xf32, #tpu.memory_space<vmem>>, %arg3: memref<1x128xf32, #tpu.memory_space<vmem>>, %arg4: memref<128x128xf32, #tpu.memory_space<vmem>>, %arg5: memref<1x128xf32, #tpu.memory_space<vmem>>, %arg6: memref<16x128xf32, #tpu.memory_space<vmem>>) attributes {dimension_semantics = [#tpu.dimension_semantics<parallel>], iteration_bounds = array<i64: 1>, scalar_prefetch = 0 : i64, scratch_operands = 0 : i64, tpu.core_type = #tpu.core_type<tc>, window_params = [{transform_indices = @transform_0, window_bounds = array<i64: 16, 128>}, {pipeline_mode = #tpu.pipeline_mode<synchronous>, transform_indices = @transform_1, window_bounds = array<i64: 128, 128>}, {pipeline_mode = #tpu.pipeline_mode<synchronous>, transform_indices = @transform_2, window_bounds = array<i64: 1, 128>}, {pipeline_mode = #tpu.pipeline_mode<synchronous>, transform_indices = @transform_3, window_bounds = array<i64: 128, 128>}, {pipeline_mode = #tpu.pipeline_mode<synchronous>, transform_indices = @transform_4, window_bounds = array<i64: 1, 128>}, {transform_indices = @transform_5, window_bounds = array<i64: 16, 128>}]} {
    %c0 = arith.constant 0 : index
    %c0_0 = arith.constant 0 : index
    %0 = vector.load %arg1[%c0, %c0_0] : memref<16x128xf32, #tpu.memory_space<vmem>>, vector<16x128xf32>
    %c0_1 = arith.constant 0 : index
    %c0_2 = arith.constant 0 : index
    %1 = vector.load %arg2[%c0_1, %c0_2] : memref<128x128xf32, #tpu.memory_space<vmem>>, vector<128x128xf32>
    %cst = arith.constant dense<0.000000e+00> : vector<16x128xf32>
    %2 = tpu.matmul %0, %1, %cst {dimension_numbers = #tpu.dot_dimension_numbers<[1], [0], [0], [1], [0, 0, 1, 1], [], []>} : vector<16x128xf32>, vector<128x128xf32>, vector<16x128xf32> -> vector<16x128xf32>
    %c0_3 = arith.constant 0 : index
    %c0_4 = arith.constant 0 : index
    %3 = vector.load %arg3[%c0_3, %c0_4] : memref<1x128xf32, #tpu.memory_space<vmem>>, vector<1x128xf32>
    %4 = vector.broadcast %3 : vector<1x128xf32> to vector<16x128xf32>
    %5 = arith.addf %2, %4 : vector<16x128xf32>
    %cst_5 = arith.constant 0.000000e+00 : f32
    %6 = vector.broadcast %cst_5 : f32 to vector<16x128xf32>
    %7 = arith.maximumf %5, %6 : vector<16x128xf32>
    %c0_6 = arith.constant 0 : index
    %c0_7 = arith.constant 0 : index
    %8 = vector.load %arg4[%c0_6, %c0_7] : memref<128x128xf32, #tpu.memory_space<vmem>>, vector<128x128xf32>
    %cst_8 = arith.constant dense<0.000000e+00> : vector<16x128xf32>
    %9 = tpu.matmul %7, %8, %cst_8 {dimension_numbers = #tpu.dot_dimension_numbers<[1], [0], [0], [1], [0, 0, 1, 1], [], []>} : vector<16x128xf32>, vector<128x128xf32>, vector<16x128xf32> -> vector<16x128xf32>
    %c0_9 = arith.constant 0 : index
    %c0_10 = arith.constant 0 : index
    %10 = vector.load %arg5[%c0_9, %c0_10] : memref<1x128xf32, #tpu.memory_space<vmem>>, vector<1x128xf32>
    %11 = vector.broadcast %10 : vector<1x128xf32> to vector<16x128xf32>
    %12 = arith.addf %9, %11 : vector<16x128xf32>
    %cst_11 = arith.constant dense<0xFF800000> : vector<16xf32>
    %13 = vector.multi_reduction <maximumf>, %12, %cst_11 [1] : vector<16x128xf32> to vector<16xf32>
    %14 = vector.shape_cast %13 : vector<16xf32> to vector<16x1xf32>
    %15 = vector.broadcast %14 : vector<16x1xf32> to vector<16x128xf32>
    %16 = arith.subf %12, %15 : vector<16x128xf32>
    %17 = math.exp %16 : vector<16x128xf32>
    %cst_12 = arith.constant dense<0.000000e+00> : vector<16xf32>
    %18 = vector.multi_reduction <add>, %17, %cst_12 [1] : vector<16x128xf32> to vector<16xf32>
    %19 = vector.shape_cast %18 : vector<16xf32> to vector<16x1xf32>
    %20 = tpu.reciprocal %19 : vector<16x1xf32> -> vector<16x1xf32>
    %21 = vector.broadcast %20 : vector<16x1xf32> to vector<16x128xf32>
    %22 = arith.mulf %17, %21 : vector<16x128xf32>
    %c0_13 = arith.constant 0 : index
    %c0_14 = arith.constant 0 : index
    %23 = vector.load %arg6[%c0_13, %c0_14] : memref<16x128xf32, #tpu.memory_space<vmem>>, vector<16x128xf32>
    tpu.vector_store %arg6[%c0_13, %c0_14], %22 {strides = array<i32>} : memref<16x128xf32, #tpu.memory_space<vmem>>, vector<16x128xf32>,
    return
  }
  func.func @transform_0(%arg0: i32) -> (i32, i32) {
    %c0_i32 = arith.constant 0 : i32
    %c0_i32_0 = arith.constant 0 : i32
    return %arg0, %c0_i32 : i32, i32
  }
  func.func @transform_1(%arg0: i32) -> (i32, i32) {
    %c0_i32 = arith.constant 0 : i32
    %c0_i32_0 = arith.constant 0 : i32
    %c0_i32_1 = arith.constant 0 : i32
    return %c0_i32, %c0_i32_0 : i32, i32
  }
  func.func @transform_2(%arg0: i32) -> (i32, i32) {
    %c0_i32 = arith.constant 0 : i32
    %c0_i32_0 = arith.constant 0 : i32
    %c0_i32_1 = arith.constant 0 : i32
    return %c0_i32, %c0_i32_0 : i32, i32
  }
  func.func @transform_3(%arg0: i32) -> (i32, i32) {
    %c0_i32 = arith.constant 0 : i32
    %c0_i32_0 = arith.constant 0 : i32
    %c0_i32_1 = arith.constant 0 : i32
    return %c0_i32, %c0_i32_0 : i32, i32
  }
  func.func @transform_4(%arg0: i32) -> (i32, i32) {
    %c0_i32 = arith.constant 0 : i32
    %c0_i32_0 = arith.constant 0 : i32
    %c0_i32_1 = arith.constant 0 : i32
    return %c0_i32, %c0_i32_0 : i32, i32
  }
  func.func @transform_5(%arg0: i32) -> (i32, i32) {
    %c0_i32 = arith.constant 0 : i32
    %c0_i32_0 = arith.constant 0 : i32
    return %arg0, %c0_i32 : i32, i32
  }
}

</mosaic_0001>

<bundles_post_ra>
// kernel: policynet_forward.1
= control target key start
LH: loop header
LB: loop body
LE: loop exit
PB: predicated region body
PF: predicated region fallthrough
CT: control target
= control target key end

     0   :  { %10 = vsyncpa [#allocation3], 0  ;;  %s496_s0 = inlined_call_operand.vmem [shape: f32[16,128], index: 0, kind: input, shape index: {}]   ;;  %s497_s1 = inlined_call_operand.hbm [shape: f32[128,128], index: 1, kind: input, shape index: {}]   ;;  %s498_s2 = inlined_call_operand.vmem [shape: f32[1,128], index: 2, kind: input, shape index: {}]   ;;  %s499_s3 = inlined_call_operand.hbm [shape: f32[128,128], index: 3, kind: input, shape index: {}]   ;;  %s500_s4 = inlined_call_operand.vmem [shape: f32[1,128], index: 4, kind: input, shape index: {}]   ;;  %s501_s5 = inlined_call_operand.vmem [shape: f32[16,128], index: 5, kind: output, shape index: {}]  }
   0x1   :  { %11 = vsyncpa [#allocation5], 0  ;;  %s438_s18 = smov [#allocation2]  }
   0x2   :  { %s19_s19 = sshll.u32 %s438_s18, 4  ;;  %s20_s19 = int_to_ptr.vmem [resolvable:$true] %s19_s19 }
   0x3   :  { %s402_s20 = scalar_lea.vmem %s20_s19, 2048  ;;  %p407_p1 = scmp.lt.s32.totalorder %s20_s19, %s20_s19 }
   0x4   :  { %p403_p0 = scmp.ne.s32.totalorder %s20_s19, %s402_s20  ;;  %p408_p2 = scmp.lt.s32.totalorder %s402_s20, %s402_s20 }
   0x6   :  { %p409_p3 = por %p408_p2, %p407_p1 }
   0x8   :  { %p410_p4 = pnand %p409_p3, %p403_p0 }
   0xa   :  { %413 = shalt.err (!%p410_p4)
}
   0xb   :  { %s439_s21 = smov 128   ;;  %s440_s22 = smov 8  }
   0xc   :  { %25 = dma.hbm_to_vmem [thread:$0]  %s497_s1, 2048, %s20_s19, [#allocation3], %s439_s21, %s439_s21, %s440_s22  }
   0xd   :  { %s441_s25 = smov [#allocation4]  }
   0xe   :  { %s33_s26 = sshll.u32 %s441_s25, 4  ;;  %s34_s26 = int_to_ptr.vmem [resolvable:$true] %s33_s26 }
   0xf   :  { %s422_s27 = scalar_lea.vmem %s34_s26, 2048  ;;  %p427_p6 = scmp.lt.s32.totalorder %s34_s26, %s34_s26 }
  0x10   :  { %p423_p5 = scmp.ne.s32.totalorder %s34_s26, %s422_s27  ;;  %p428_p7 = scmp.lt.s32.totalorder %s422_s27, %s422_s27 }
  0x12   :  { %p429_p8 = por %p428_p7, %p427_p6 }
  0x14   :  { %p430_p9 = pnand %p429_p8, %p423_p5 }
  0x16   :  { %433 = shalt.err (!%p430_p9)
}
  0x17   :  { %39 = dma.hbm_to_vmem [thread:$0]  %s499_s3, 2048, %s34_s26, [#allocation5], %s439_s21, %s439_s21, %s440_s22  }
  0x18   :  { %434 = dma.done.wait [#allocation3], 2048  }
  0x19   :  { %435 = vsyncadd [#allocation3], 4294965248 }
  0x1a   :  { %436 = dma.done.wait [#allocation5], 2048  }
  0x1b   :  { %437 = vsyncadd [#allocation5], 4294965248  ;;  %v65_v0 = vld [vmem:[#allocation2 + $0x78] sm:$0xff]  ;;  %v64_v1 = vld [vmem:[#allocation2 + $0x70] sm:$0xff] }
  0x1c   :  { %312 = vmatprep.subr.mxu0 %v65_v0  ;;  %v63_v2 = vld [vmem:[#allocation2 + $0x68] sm:$0xff]  ;;  %v62_v3 = vld [vmem:[#allocation2 + $0x60] sm:$0xff]  ;;  %v61_v5 = vld [vmem:[#allocation2 + $0x58] sm:$0xff] }
  0x1d   :  { %313 = vmatpush3.msra.mxu0 %v65_v0  ;;  %v48_v4 = vld [vmem:[%s496_s0] sm:$0xff]  ;;  %v165_v6 = vld [vmem:[#allocation4 + $0x78] sm:$0xff]  ;;  %v164_v7 = vld [vmem:[#allocation4 + $0x70] sm:$0xff] }
  0x1e   :  { %314 = vmatprep.subr.mxu0 %v64_v1  ;;  %344 = vmatprep.mubr.f32.mxu0 %v48_v4  ;;  %v60_v8 = vld [vmem:[#allocation2 + $0x50] sm:$0xff]  ;;  %v163_v9 = vld [vmem:[#allocation4 + $0x68] sm:$0xff]  ;;  %v162_v11 = vld [vmem:[#allocation4 + $0x60] sm:$0xff] }
  0x1f   :  { %315 = vmatpush3.msra.mxu0 %v64_v1  ;;  %347 = vmatprep.subr.mxu1 %v165_v6  ;;  %v59_v10 = vld [vmem:[#allocation2 + $0x48] sm:$0xff]  ;;  %v58_v12 = vld [vmem:[#allocation2 + $0x40] sm:$0xff]  ;;  %v161_v13 = vld [vmem:[#allocation4 + $0x58] sm:$0xff] }
  0x20   :  { %316 = vmatprep.subr.mxu0 %v63_v2  ;;  %348 = vmatpush3.msra.mxu1 %v165_v6  ;;  %v57_v14 = vld [vmem:[#allocation2 + $0x38] sm:$0xff]  ;;  %v160_v15 = vld [vmem:[#allocation4 + $0x50] sm:$0xff]  ;;  %v159_v17 = vld [vmem:[#allocation4 + $0x48] sm:$0xff] }
  0x21   :  { %317 = vmatpush3.msra.mxu0 %v63_v2  ;;  %349 = vmatprep.subr.mxu1 %v164_v7  ;;  %v56_v16 = vld [vmem:[#allocation2 + $0x30] sm:$0xff]  ;;  %v55_v18 = vld [vmem:[#allocation2 + $0x28] sm:$0xff]  ;;  %v158_v19 = vld [vmem:[#allocation4 + $0x40] sm:$0xff] }
  0x22   :  { %318 = vmatprep.subr.mxu0 %v62_v3  ;;  %350 = vmatpush3.msra.mxu1 %v164_v7  ;;  %v54_v20 = vld [vmem:[#allocation2 + $0x20] sm:$0xff]  ;;  %v157_v21 = vld [vmem:[#allocation4 + $0x38] sm:$0xff]  ;;  %v156_v23 = vld [vmem:[#allocation4 + $0x30] sm:$0xff] }
  0x23   :  { %319 = vmatpush3.msra.mxu0 %v62_v3  ;;  %351 = vmatprep.subr.mxu1 %v163_v9  ;;  %v53_v22 = vld [vmem:[#allocation2 + $0x18] sm:$0xff]  ;;  %v52_v24 = vld [vmem:[#allocation2 + $0x10] sm:$0xff]  ;;  %v155_v25 = vld [vmem:[#allocation4 + $0x28] sm:$0xff] }
  0x24   :  { %320 = vmatprep.subr.mxu0 %v61_v5  ;;  %352 = vmatpush3.msra.mxu1 %v163_v9  ;;  %v51_v26 = vld [vmem:[#allocation2 + $0x8] sm:$0xff]  ;;  %v154_v27 = vld [vmem:[#allocation4 + $0x20] sm:$0xff]  ;;  %v153_v30 = vld [vmem:[#allocation4 + $0x18] sm:$0xff] }
  0x25   :  { %321 = vmatpush3.msra.mxu0 %v61_v5  ;;  %353 = vmatprep.subr.mxu1 %v162_v11  ;;  %v50_v28 = vld [vmem:[#allocation2] sm:$0xff]  ;;  %v49_v29 = vld [vmem:[%s496_s0 + $0x8] sm:$0xff]  ;;  %v152_v31 = vld [vmem:[#allocation4 + $0x10] sm:$0xff] }
  0x26   :  { %322 = vmatprep.subr.mxu0 %v60_v8  ;;  %354 = vmatpush3.msra.mxu1 %v162_v11  ;;  %v151_v32 = vld [vmem:[#allocation4 + $0x8] sm:$0xff]  ;;  %v150_v33 = vld [vmem:[#allocation4] sm:$0xff] }
  0x27   :  { %323 = vmatpush3.msra.mxu0 %v60_v8  ;;  %355 = vmatprep.subr.mxu1 %v161_v13  ;;  %v274_v34 = vld [vmem:[%s498_s2] ss:$0 sm:$0xff] }
  0x28   :  { %324 = vmatprep.subr.mxu0 %v59_v10  ;;  %356 = vmatpush3.msra.mxu1 %v161_v13  ;;  %v275_v42 = vld [vmem:[%s500_s4] ss:$0 sm:$0xff] }
  0x29   :  { %325 = vmatpush3.msra.mxu0 %v59_v10  ;;  %357 = vmatprep.subr.mxu1 %v160_v15 }
  0x2a   :  { %326 = vmatprep.subr.mxu0 %v58_v12  ;;  %358 = vmatpush3.msra.mxu1 %v160_v15 }
  0x2b   :  { %327 = vmatpush3.msra.mxu0 %v58_v12  ;;  %359 = vmatprep.subr.mxu1 %v159_v17 }
  0x2c   :  { %328 = vmatprep.subr.mxu0 %v57_v14  ;;  %360 = vmatpush3.msra.mxu1 %v159_v17 }
  0x2d   :  { %329 = vmatpush3.msra.mxu0 %v57_v14  ;;  %361 = vmatprep.subr.mxu1 %v158_v19 }
  0x2e   :  { %330 = vmatprep.subr.mxu0 %v56_v16  ;;  %362 = vmatpush3.msra.mxu1 %v158_v19 }
  0x2f   :  { %331 = vmatpush3.msra.mxu0 %v56_v16  ;;  %363 = vmatprep.subr.mxu1 %v157_v21 }
  0x30   :  { %332 = vmatprep.subr.mxu0 %v55_v18  ;;  %364 = vmatpush3.msra.mxu1 %v157_v21 }
  0x31   :  { %333 = vmatpush3.msra.mxu0 %v55_v18  ;;  %365 = vmatprep.subr.mxu1 %v156_v23 }
  0x32   :  { %334 = vmatprep.subr.mxu0 %v54_v20  ;;  %366 = vmatpush3.msra.mxu1 %v156_v23 }
  0x33   :  { %335 = vmatpush3.msra.mxu0 %v54_v20  ;;  %367 = vmatprep.subr.mxu1 %v155_v25 }
  0x34   :  { %336 = vmatprep.subr.mxu0 %v53_v22  ;;  %368 = vmatpush3.msra.mxu1 %v155_v25 }
  0x35   :  { %337 = vmatpush3.msra.mxu0 %v53_v22  ;;  %369 = vmatprep.subr.mxu1 %v154_v27 }
  0x36   :  { %338 = vmatprep.subr.mxu0 %v52_v24  ;;  %370 = vmatpush3.msra.mxu1 %v154_v27 }
  0x37   :  { %339 = vmatpush3.msra.mxu0 %v52_v24  ;;  %371 = vmatprep.subr.mxu1 %v153_v30 }
  0x38   :  { %340 = vmatprep.subr.mxu0 %v51_v26  ;;  %372 = vmatpush3.msra.mxu1 %v153_v30 }
  0x39   :  { %341 = vmatpush3.msra.mxu0 %v51_v26  ;;  %373 = vmatprep.subr.mxu1 %v152_v31 }
  0x3a   :  { %342 = vmatprep.subr.mxu0 %v50_v28  ;;  %374 = vmatpush3.msra.mxu1 %v152_v31 }
  0x3b   :  { %343 = vmatpush3.msra.mxu0 %v50_v28  ;;  %375 = vmatprep.subr.mxu1 %v151_v32 }
  0x3c   :  { %345 = vmatmul.mubr.f32.vlgmr.msra.gmra.mxu0 %v49_v29  ;;  %376 = vmatpush3.msra.mxu1 %v151_v32 }
  0x3d   :  { %377 = vmatprep.subr.mxu1 %v150_v33 }
  0x3e   :  { %378 = vmatpush3.msra.mxu1 %v150_v33 }
  0xfc   :  { %v346_v35 = vpop.f32.mrf.mxu0 }
  0xfd   :  { %v145_v36 = vadd.f32 %v346_v35, %v274_v34 }
  0xfe   :  { %v139_v37 = vpop.f32.mrf.mxu0 }
  0xff   :  { %v140_v38 = vadd.f32 %v274_v34, %v139_v37  ;;  %v149_v40 = vmax.f32 %v145_v36, 0.0 }
 0x101   :  { %v148_v39 = vmax.f32 %v140_v38, 0.0 }
 0x103   :  { %379 = vmatprep.mubr.f32.mxu1 %v148_v39 }
 0x104   :  { %380 = vmatmul.mubr.f32.vlgmr.msra.gmra.mxu1 %v149_v40 }
 0x1c4   :  { %v381_v41 = vpop.f32.mrf.mxu1 }
 0x1c5   :  { %v245_v45 = vadd.f32 %v381_v41, %v275_v42 }
 0x1c6   :  { %v239_v43 = vpop.f32.mrf.mxu1 }
 0x1c7   :  { %v240_v44 = vadd.f32 %v275_v42, %v239_v43 }
 0x1c9   :  { %248 = vmax.xlane.f32.xlu0 %v240_v44 }
 0x1cd   :  { %250 = vmax.xlane.f32.xlu0 %v245_v45 }
 0x252   :  { %v249_v46 = vpop.xlane.xlu0 %248 }
 0x253   :  { %v252_v47 = vsub.f32 %v240_v44, %v249_v46 }
 0x255   :  { %v254_v48 = vmul.f32 1.442695, %v252_v47 }
 0x256   :  { %v251_v49 = vpop.xlane.xlu0 %250 }
 0x257   :  { %386 = vpow2.f32 %v254_v48  ;;  %v253_v50 = vsub.f32 %v245_v45, %v251_v49 }
 0x259   :  { %v256_v51 = vmul.f32 1.442695, %v253_v50 }
 0x25b   :  { %388 = vpow2.f32 %v256_v51 }
 0x264   :  { %v387_v52 = vpop.eup %386 }
 0x265   :  { %258 = vadd.xlane.f32.xlu1 %v387_v52 }
 0x268   :  { %v389_v53 = vpop.eup %388 }
 0x269   :  { %260 = vadd.xlane.f32.xlu1 %v389_v53 }
 0x2ee   :  { %v259_v54 = vpop.xlane.xlu1 %258 }
 0x2ef   :  { %390 = vrcp.f32 %v259_v54 }
 0x2f2   :  { %v261_v55 = vpop.xlane.xlu1 %260 }
 0x2f3   :  { %392 = vrcp.f32 %v261_v55 }
 0x2fc   :  { %v391_v56 = vpop.eup %390 }
 0x2fd   :  { %v264_v57 = vmul.f32 %v391_v56, %v387_v52 }
 0x2ff   :  { %266 = vst [vmem:[%s501_s5] sm:$0xff] %v264_v57 }
 0x300   :  { %v393_v58 = vpop.eup %392 }
 0x301   :  { %v265_v59 = vmul.f32 %v393_v58, %v389_v53 }
 0x303   :  { %267 = vst [vmem:[%s501_s5 + $0x8] sm:$0xff] %v265_v59 }
 0x304   :  { %272 = vsyncpa [#allocation3], 1 }
 0x305   :  { %273 = vsyncpa [#allocation5], 1 }

</bundles_post_ra>
